<compile_context>
chip_gen: v7x
topology: tpu7x:2x2x1
jax: 0.10.0
libtpu: 0.0.40
codegen_flags: <defaults>
</compile_context>

<pallas_src>
import functools
import math

import jax
import jax.numpy as jnp
from jax.experimental import pallas as pl
from jax.experimental.pallas import tpu as pltpu


def _arcsin_poly(x):
    # Abramowitz & Stegun 4.4.46 polynomial approx of arcsin on [0, 1]
    # (|err| <= 2e-8); uses only sqrt/mul/add so it lowers cleanly on the VPU.
    a = (1.5707963050, -0.2145988016, 0.0889789874, -0.0501743046,
         0.0308918810, -0.0170881256, 0.0066700901, -0.0012624911)
    p = a[7]
    for c in a[6::-1]:
        p = p * x + c
    return jnp.float32(math.pi / 2) - jnp.sqrt(jnp.maximum(1.0 - x, 0.0)) * p


# ------------------------------------------------------------------
# Single fused kernel: mask + encode_image (one MXU matmul) + spherical
# distance + explainability dice, reduced to the final scalar loss.
# ------------------------------------------------------------------
def fused_prompt_loss_kernel(img_ref, mask_ref, rel_ref, w_ref, txt_ref, lam_ref, o_ref,
                             *, C, sign_weight, abs_weight, t, temperature):
    B = img_ref.shape[0]

    x = img_ref[...]                                   # [B, C*HW]  f32 (channel-major lanes)
    m = mask_ref[...]                                  # [B, HW]    f32 (0/1)

    # Broadcast mask over channels along lanes (channel-major layout) and build the
    # [2B, C*HW] LHS = [image ; image*mask] without ever touching HBM with it.
    m_c = jnp.concatenate([m] * C, axis=-1)            # [B, C*HW]
    lhs = jnp.concatenate([x, x * m_c], axis=0).astype(w_ref.dtype)   # [2B, C*HW] bf16

    # One MXU push: M=2B, K=C*HW, N=D_pad (lane-dense), f32 accumulation.
    emb = jnp.dot(lhs, w_ref[...], preferred_element_type=jnp.float32)  # [2B, D_pad]

    # ---- spherical distance to the (pre-normalized, zero-padded) text embedding ----
    e = txt_ref[...]                                   # [1, D_pad] f32
    ss = jnp.sum(emb * emb, axis=-1, keepdims=True)    # [2B, 1]
    dotp = jnp.sum(emb * e, axis=-1, keepdims=True)    # [2B, 1]
    cos = dotp * jax.lax.rsqrt(jnp.maximum(ss, 1e-24))       # F.normalize folded into cos
    # ||a - b|| / 2 for unit vectors == sqrt(0.5 - 0.5 * cos)
    half = jnp.minimum(jnp.sqrt(jnp.maximum(0.5 - 0.5 * cos, 0.0)), 1.0)
    th = _arcsin_poly(half)
    dist = 2.0 * th * th                               # .div(2).arcsin().pow(2).mul(2)
    dists_sum = jnp.sum(dist, axis=0, keepdims=True)   # [1, 1]

    # ---- explainability dice loss ----
    rel = rel_ref[...]                                 # [B, HW], positive relevance
    # sum-normalize then max-normalize == max-normalize for positive relevance
    rel_max = jnp.maximum(jnp.max(rel, axis=-1, keepdims=True), 1e-12)
    rel_n = rel / rel_max                              # exact divide (correctness feedback)
    binarized = jax.nn.sigmoid((rel_n - t) * temperature)
    total = jnp.sum(binarized, axis=-1, keepdims=True)          # [B, 1]
    inter = jnp.sum(binarized * m, axis=-1, keepdims=True)      # [B, 1]
    # 2*inter / (2*inter + union) with union = total - inter  ==  2*inter / (inter + total)
    dice = (2.0 * inter) / jnp.maximum(inter + total, 1e-12)
    dice_sum = jnp.sum(dice, axis=0, keepdims=True)    # [1, 1]

    lam = lam_ref[0]                                   # dynamic_lambda (SMEM scalar)
    loss = dists_sum * (sign_weight / float(2 * B)) - dice_sum * (lam / float(B))
    o_ref[...] = abs_weight * loss                     # weight.abs() * loss


# ------------------------------------------------------------------
# PromptLoss (JAX/Pallas version)
# ------------------------------------------------------------------
class PromptLossPallas:
    def __init__(self, prompt, key, *, token_len=8, embed_dim=32, image_shape=(3, 16, 16)):
        _text, weight, stop = self._parse_prompt(prompt)
        self.weight = float(weight)
        self.stop = float(stop)       # unused in forward (replace_grad is gradient-only)
        self.t = 0.1
        self.temperature = 20.0

        C, H, W = image_shape
        self.C, self.H, self.W = C, H, W
        feat = C * H * W
        # Lane-dense embedding dim: zero-pad to a multiple of 128.
        d_pad = max(128, ((embed_dim + 127) // 128) * 128)
        self.d_pad = d_pad

        k_tok, k_wi, k_wt = jax.random.split(key, 3)

        # deterministic synthetic "tokenized_text" (stand-in for clip.tokenize)
        tok = jax.random.randint(k_tok, (1, token_len), 0, 1000).astype(jnp.float32)
        w_txt = jax.random.normal(k_wt, (token_len, embed_dim), jnp.float32) / jnp.sqrt(
            float(token_len))
        # constant per prompt: encode_text + F.normalize hoisted out of the kernel,
        # then zero-padded to D_pad (zeros contribute nothing to dot products / norms).
        txt_emb = tok @ w_txt                                    # [1, D]
        txt_normed = txt_emb / jnp.maximum(
            jnp.linalg.norm(txt_emb, axis=-1, keepdims=True), 1e-12)
        self.txt_normed = jnp.pad(txt_normed, ((0, 0), (0, d_pad - embed_dim)))

        # stand-in image encoder weights (stand-in for CLIP perceptor), kept flat as
        # [C*HW, D_pad] (row-major match with image.reshape(B, C*HW)), zero-padded on
        # the N dim and pre-cast to bf16 for the MXU.
        w_img = jax.random.normal(k_wi, (feat, embed_dim), jnp.float32) / jnp.sqrt(float(feat))
        w_img = jnp.pad(w_img, ((0, 0), (0, d_pad - embed_dim)))
        self.w_img = w_img.astype(jnp.bfloat16)                  # [C*HW, D_pad]

        self._jit_forward = jax.jit(self._forward)

    @staticmethod
    def _parse_prompt(prompt):
        vals = prompt.rsplit(':', 2)
        vals = vals + ['', '1', '-inf'][len(vals):]
        return vals[0], float(vals[1]), float(vals[2])

    def _forward(self, input_img, mask, relevance, dynamic_lambda):
        B = input_img.shape[0]
        C, H, W = self.C, self.H, self.W
        HW = H * W

        # Free row-major reshapes: every kernel operand is a 2-D lane-dense block.
        img2 = input_img.reshape(B, C * HW)       # [B, C*HW]  (768 = 6*128 lanes)
        mask2 = mask.reshape(B, HW)               # [B, HW]    (256 = 2*128 lanes)
        rel2 = relevance.reshape(B, HW)           # [B, HW]
        lam = jnp.asarray(dynamic_lambda, jnp.float32).reshape(1)

        sign_w = float((self.weight > 0.0) - (self.weight < 0.0))
        kernel = functools.partial(
            fused_prompt_loss_kernel,
            C=C, sign_weight=sign_w, abs_weight=abs(self.weight),
            t=self.t, temperature=self.temperature)

        out = pl.pallas_call(
            kernel,
            out_shape=jax.ShapeDtypeStruct((1, 1), jnp.float32),
            grid=(1,),
            in_specs=[
                pl.BlockSpec((B, C * HW), lambda i: (0, 0)),             # image (flat)
                pl.BlockSpec((B, HW), lambda i: (0, 0)),                 # mask
                pl.BlockSpec((B, HW), lambda i: (0, 0)),                 # relevance
                pl.BlockSpec(self.w_img.shape, lambda i: (0, 0)),        # encoder weights
                pl.BlockSpec(self.txt_normed.shape, lambda i: (0, 0)),   # text embedding
                pl.BlockSpec(memory_space=pltpu.MemorySpace.SMEM),       # dynamic_lambda
            ],
            out_specs=pl.BlockSpec((1, 1), lambda i: (0, 0)),
            compiler_params=pltpu.CompilerParams(
                dimension_semantics=("arbitrary",)),
        )(img2, mask2, rel2, self.w_img, self.txt_normed, lam)
        return out[0, 0]

    def __call__(self, input_img, mask, relevance, dynamic_lambda):
        return self._jit_forward(input_img, mask, relevance, dynamic_lambda)


if __name__ == "__main__":
    key = jax.random.PRNGKey(0)
    k_img, k_mask, k_rel, k_params = jax.random.split(key, 4)

    B, C, H, W = 2, 3, 16, 16
    input_img = jax.random.normal(k_img, (B, C, H, W), jnp.float32)
    mask = (jax.random.uniform(k_mask, (B, 1, H, W)) > 0.5).astype(jnp.float32)
    # synthetic positive relevance map (stand-in for CLIP attention relevance)
    relevance = jax.random.uniform(k_rel, (B, 1, H, W), jnp.float32) + 1e-3
    dynamic_lambda = jnp.float32(0.5)

    prompt_loss = PromptLossPallas("a photo of a cat:1:-inf", k_params,
                                   token_len=8, embed_dim=32, image_shape=(C, H, W))
    out = prompt_loss(input_img, mask, relevance, dynamic_lambda)
    jax.block_until_ready(out)
    print("KERNEL_OK")
</pallas_src>

<mosaic_0001>
module attributes {stable_mosaic.version = 11 : i64} {
  func.func @fused_prompt_loss_kernel(%arg0: i32, %arg1: memref<2x768xf32, #tpu.memory_space<vmem>>, %arg2: memref<2x256xf32, #tpu.memory_space<vmem>>, %arg3: memref<2x256xf32, #tpu.memory_space<vmem>>, %arg4: memref<768x128xbf16, #tpu.memory_space<vmem>>, %arg5: memref<1x128xf32, #tpu.memory_space<vmem>>, %arg6: memref<1xf32, #tpu.memory_space<smem>>, %arg7: memref<1x1xf32, #tpu.memory_space<vmem>>) attributes {dimension_semantics = [#tpu.dimension_semantics<arbitrary>], iteration_bounds = array<i64: 1>, scalar_prefetch = 0 : i64, scratch_operands = 0 : i64, tpu.core_type = #tpu.core_type<tc>, window_params = [{pipeline_mode = #tpu.pipeline_mode<synchronous>, transform_indices = @transform_0, window_bounds = array<i64: 2, 768>}, {pipeline_mode = #tpu.pipeline_mode<synchronous>, transform_indices = @transform_1, window_bounds = array<i64: 2, 256>}, {pipeline_mode = #tpu.pipeline_mode<synchronous>, transform_indices = @transform_2, window_bounds = array<i64: 2, 256>}, {pipeline_mode = #tpu.pipeline_mode<synchronous>, transform_indices = @transform_3, window_bounds = array<i64: 768, 128>}, {pipeline_mode = #tpu.pipeline_mode<synchronous>, transform_indices = @transform_4, window_bounds = array<i64: 1, 128>}, {transform_indices = @transform_5, window_bounds = array<i64: 1>}, {pipeline_mode = #tpu.pipeline_mode<synchronous>, transform_indices = @transform_6, window_bounds = array<i64: 1, 1>}]} {
    %c0 = arith.constant 0 : index
    %c0_0 = arith.constant 0 : index
    %0 = vector.load %arg1[%c0, %c0_0] : memref<2x768xf32, #tpu.memory_space<vmem>>, vector<2x768xf32>
    %c0_1 = arith.constant 0 : index
    %c0_2 = arith.constant 0 : index
    %1 = vector.load %arg2[%c0_1, %c0_2] : memref<2x256xf32, #tpu.memory_space<vmem>>, vector<2x256xf32>
    %2 = tpu.concatenate %1, %1, %1 in 1 : vector<2x256xf32>, vector<2x256xf32>, vector<2x256xf32> -> vector<2x768xf32>
    %3 = arith.mulf %0, %2 : vector<2x768xf32>
    %4 = tpu.concatenate %0, %3 in 0 : vector<2x768xf32>, vector<2x768xf32> -> vector<4x768xf32>
    %5 = arith.truncf %4 : vector<4x768xf32> to vector<4x768xbf16>
    %c0_3 = arith.constant 0 : index
    %c0_4 = arith.constant 0 : index
    %6 = vector.load %arg4[%c0_3, %c0_4] : memref<768x128xbf16, #tpu.memory_space<vmem>>, vector<768x128xbf16>
    %cst = arith.constant dense<0.000000e+00> : vector<4x128xf32>
    %7 = tpu.matmul %5, %6, %cst {dimension_numbers = #tpu.dot_dimension_numbers<[1], [0], [0], [1], [0, 0, 1, 1], [], []>} : vector<4x768xbf16>, vector<768x128xbf16>, vector<4x128xf32> -> vector<4x128xf32>
    %c0_5 = arith.constant 0 : index
    %c0_6 = arith.constant 0 : index
    %8 = vector.load %arg5[%c0_5, %c0_6] : memref<1x128xf32, #tpu.memory_space<vmem>>, vector<1x128xf32>
    %9 = arith.mulf %7, %7 : vector<4x128xf32>
    %cst_7 = arith.constant dense<0.000000e+00> : vector<4xf32>
    %10 = vector.multi_reduction <add>, %9, %cst_7 [1] : vector<4x128xf32> to vector<4xf32>
    %11 = vector.shape_cast %10 : vector<4xf32> to vector<4x1xf32>
    %12 = vector.broadcast %8 : vector<1x128xf32> to vector<4x128xf32>
    %13 = arith.mulf %7, %12 : vector<4x128xf32>
    %cst_8 = arith.constant dense<0.000000e+00> : vector<4xf32>
    %14 = vector.multi_reduction <add>, %13, %cst_8 [1] : vector<4x128xf32> to vector<4xf32>
    %15 = vector.shape_cast %14 : vector<4xf32> to vector<4x1xf32>
    %cst_9 = arith.constant 1.000000e-24 : f32
    %16 = vector.broadcast %cst_9 : f32 to vector<4x1xf32>
    %17 = arith.maximumf %11, %16 : vector<4x1xf32>
    %18 = math.rsqrt %17 : vector<4x1xf32>
    %19 = arith.mulf %15, %18 : vector<4x1xf32>
    %cst_10 = arith.constant 5.000000e-01 : f32
    %20 = vector.broadcast %cst_10 : f32 to vector<4x1xf32>
    %21 = arith.mulf %20, %19 : vector<4x1xf32>
    %cst_11 = arith.constant 5.000000e-01 : f32
    %22 = vector.broadcast %cst_11 : f32 to vector<4x1xf32>
    %23 = arith.subf %22, %21 : vector<4x1xf32>
    %cst_12 = arith.constant 0.000000e+00 : f32
    %24 = vector.broadcast %cst_12 : f32 to vector<4x1xf32>
    %25 = arith.maximumf %23, %24 : vector<4x1xf32>
    %26 = math.sqrt %25 : vector<4x1xf32>
    %cst_13 = arith.constant 1.000000e+00 : f32
    %27 = vector.broadcast %cst_13 : f32 to vector<4x1xf32>
    %28 = arith.minimumf %26, %27 : vector<4x1xf32>
    %cst_14 = arith.constant -0.0012624911 : f32
    %29 = vector.broadcast %cst_14 : f32 to vector<4x1xf32>
    %30 = arith.mulf %29, %28 : vector<4x1xf32>
    %cst_15 = arith.constant 6.670090e-03 : f32
    %31 = vector.broadcast %cst_15 : f32 to vector<4x1xf32>
    %32 = arith.addf %30, %31 : vector<4x1xf32>
    %33 = arith.mulf %32, %28 : vector<4x1xf32>
    %cst_16 = arith.constant -0.0170881264 : f32
    %34 = vector.broadcast %cst_16 : f32 to vector<4x1xf32>
    %35 = arith.addf %33, %34 : vector<4x1xf32>
    %36 = arith.mulf %35, %28 : vector<4x1xf32>
    %cst_17 = arith.constant 0.0308918804 : f32
    %37 = vector.broadcast %cst_17 : f32 to vector<4x1xf32>
    %38 = arith.addf %36, %37 : vector<4x1xf32>
    %39 = arith.mulf %38, %28 : vector<4x1xf32>
    %cst_18 = arith.constant -0.0501743034 : f32
    %40 = vector.broadcast %cst_18 : f32 to vector<4x1xf32>
    %41 = arith.addf %39, %40 : vector<4x1xf32>
    %42 = arith.mulf %41, %28 : vector<4x1xf32>
    %cst_19 = arith.constant 0.0889789909 : f32
    %43 = vector.broadcast %cst_19 : f32 to vector<4x1xf32>
    %44 = arith.addf %42, %43 : vector<4x1xf32>
    %45 = arith.mulf %44, %28 : vector<4x1xf32>
    %cst_20 = arith.constant -0.214598805 : f32
    %46 = vector.broadcast %cst_20 : f32 to vector<4x1xf32>
    %47 = arith.addf %45, %46 : vector<4x1xf32>
    %48 = arith.mulf %47, %28 : vector<4x1xf32>
    %cst_21 = arith.constant 1.57079625 : f32
    %49 = vector.broadcast %cst_21 : f32 to vector<4x1xf32>
    %50 = arith.addf %48, %49 : vector<4x1xf32>
    %cst_22 = arith.constant 1.000000e+00 : f32
    %51 = vector.broadcast %cst_22 : f32 to vector<4x1xf32>
    %52 = arith.subf %51, %28 : vector<4x1xf32>
    %cst_23 = arith.constant 0.000000e+00 : f32
    %53 = vector.broadcast %cst_23 : f32 to vector<4x1xf32>
    %54 = arith.maximumf %52, %53 : vector<4x1xf32>
    %55 = math.sqrt %54 : vector<4x1xf32>
    %56 = arith.mulf %55, %50 : vector<4x1xf32>
    %cst_24 = arith.constant 1.57079637 : f32
    %57 = vector.broadcast %cst_24 : f32 to vector<4x1xf32>
    %58 = arith.subf %57, %56 : vector<4x1xf32>
    %cst_25 = arith.constant 2.000000e+00 : f32
    %59 = vector.broadcast %cst_25 : f32 to vector<4x1xf32>
    %60 = arith.mulf %59, %58 : vector<4x1xf32>
    %61 = arith.mulf %60, %58 : vector<4x1xf32>
    %cst_26 = arith.constant dense<0.000000e+00> : vector<1xf32>
    %62 = vector.multi_reduction <add>, %61, %cst_26 [0] : vector<4x1xf32> to vector<1xf32>
    %63 = vector.shape_cast %62 : vector<1xf32> to vector<1x1xf32>
    %c0_27 = arith.constant 0 : index
    %c0_28 = arith.constant 0 : index
    %64 = vector.load %arg3[%c0_27, %c0_28] : memref<2x256xf32, #tpu.memory_space<vmem>>, vector<2x256xf32>
    %cst_29 = arith.constant dense<0xFF800000> : vector<2xf32>
    %65 = vector.multi_reduction <maximumf>, %64, %cst_29 [1] : vector<2x256xf32> to vector<2xf32>
    %66 = vector.shape_cast %65 : vector<2xf32> to vector<2x1xf32>
    %cst_30 = arith.constant 9.99999996E-13 : f32
    %67 = vector.broadcast %cst_30 : f32 to vector<2x1xf32>
    %68 = arith.maximumf %66, %67 : vector<2x1xf32>
    %69 = vector.broadcast %68 : vector<2x1xf32> to vector<2x256xf32>
    %70 = arith.divf %64, %69 : vector<2x256xf32>
    %cst_31 = arith.constant 1.000000e-01 : f32
    %71 = vector.broadcast %cst_31 : f32 to vector<2x256xf32>
    %72 = arith.subf %70, %71 : vector<2x256xf32>
    %cst_32 = arith.constant 2.000000e+01 : f32
    %73 = vector.broadcast %cst_32 : f32 to vector<2x256xf32>
    %74 = arith.mulf %72, %73 : vector<2x256xf32>
    %75 = arith.negf %74 : vector<2x256xf32>
    %76 = math.exp %75 : vector<2x256xf32>
    %cst_33 = arith.constant 1.000000e+00 : f32
    %77 = vector.broadcast %cst_33 : f32 to vector<2x256xf32>
    %78 = arith.addf %77, %76 : vector<2x256xf32>
    %79 = arith.divf %77, %78 : vector<2x256xf32>
    %cst_34 = arith.constant dense<0.000000e+00> : vector<2xf32>
    %80 = vector.multi_reduction <add>, %79, %cst_34 [1] : vector<2x256xf32> to vector<2xf32>
    %81 = vector.shape_cast %80 : vector<2xf32> to vector<2x1xf32>
    %82 = arith.mulf %79, %1 : vector<2x256xf32>
    %cst_35 = arith.constant dense<0.000000e+00> : vector<2xf32>
    %83 = vector.multi_reduction <add>, %82, %cst_35 [1] : vector<2x256xf32> to vector<2xf32>
    %84 = vector.shape_cast %83 : vector<2xf32> to vector<2x1xf32>
    %cst_36 = arith.constant 2.000000e+00 : f32
    %85 = vector.broadcast %cst_36 : f32 to vector<2x1xf32>
    %86 = arith.mulf %85, %84 : vector<2x1xf32>
    %87 = arith.addf %84, %81 : vector<2x1xf32>
    %cst_37 = arith.constant 9.99999996E-13 : f32
    %88 = vector.broadcast %cst_37 : f32 to vector<2x1xf32>
    %89 = arith.maximumf %87, %88 : vector<2x1xf32>
    %90 = arith.divf %86, %89 : vector<2x1xf32>
    %cst_38 = arith.constant dense<0.000000e+00> : vector<1xf32>
    %91 = vector.multi_reduction <add>, %90, %cst_38 [0] : vector<2x1xf32> to vector<1xf32>
    %92 = vector.shape_cast %91 : vector<1xf32> to vector<1x1xf32>
    %c0_39 = arith.constant 0 : index
    %93 = memref.load %arg6[%c0_39] : memref<1xf32, #tpu.memory_space<smem>>
    %cst_40 = arith.constant 2.500000e-01 : f32
    %94 = vector.broadcast %cst_40 : f32 to vector<1x1xf32>
    %95 = arith.mulf %63, %94 : vector<1x1xf32>
    %cst_41 = arith.constant 2.000000e+00 : f32
    %96 = arith.divf %93, %cst_41 : f32
    %97 = vector.broadcast %96 : f32 to vector<1x1xf32>
    %98 = arith.mulf %92, %97 : vector<1x1xf32>
    %99 = arith.subf %95, %98 : vector<1x1xf32>
    %cst_42 = arith.constant 1.000000e+00 : f32
    %100 = vector.broadcast %cst_42 : f32 to vector<1x1xf32>
    %101 = arith.mulf %100, %99 : vector<1x1xf32>
    %c0_43 = arith.constant 0 : index
    %c0_44 = arith.constant 0 : index
    %102 = vector.load %arg7[%c0_43, %c0_44] : memref<1x1xf32, #tpu.memory_space<vmem>>, vector<1x1xf32>
    tpu.vector_store %arg7[%c0_43, %c0_44], %101 {strides = array<i32>} : memref<1x1xf32, #tpu.memory_space<vmem>>, vector<1x1xf32>,
    return
  }
  func.func @transform_0(%arg0: i32) -> (i32, i32) {
    %c0_i32 = arith.constant 0 : i32
    %c0_i32_0 = arith.constant 0 : i32
    %c0_i32_1 = arith.constant 0 : i32
    return %c0_i32, %c0_i32_0 : i32, i32
  }
  func.func @transform_1(%arg0: i32) -> (i32, i32) {
    %c0_i32 = arith.constant 0 : i32
    %c0_i32_0 = arith.constant 0 : i32
    %c0_i32_1 = arith.constant 0 : i32
    return %c0_i32, %c0_i32_0 : i32, i32
  }
  func.func @transform_2(%arg0: i32) -> (i32, i32) {
    %c0_i32 = arith.constant 0 : i32
    %c0_i32_0 = arith.constant 0 : i32
    %c0_i32_1 = arith.constant 0 : i32
    return %c0_i32, %c0_i32_0 : i32, i32
  }
  func.func @transform_3(%arg0: i32) -> (i32, i32) {
    %c0_i32 = arith.constant 0 : i32
    %c0_i32_0 = arith.constant 0 : i32
    %c0_i32_1 = arith.constant 0 : i32
    return %c0_i32, %c0_i32_0 : i32, i32
  }
  func.func @transform_4(%arg0: i32) -> (i32, i32) {
    %c0_i32 = arith.constant 0 : i32
    %c0_i32_0 = arith.constant 0 : i32
    %c0_i32_1 = arith.constant 0 : i32
    return %c0_i32, %c0_i32_0 : i32, i32
  }
  func.func @transform_5(%arg0: i32) -> i32 {
    %c0_i32 = arith.constant 0 : i32
    %c0_i32_0 = arith.constant 0 : i32
    return %c0_i32 : i32
  }
  func.func @transform_6(%arg0: i32) -> (i32, i32) {
    %c0_i32 = arith.constant 0 : i32
    %c0_i32_0 = arith.constant 0 : i32
    %c0_i32_1 = arith.constant 0 : i32
    return %c0_i32, %c0_i32_0 : i32, i32
  }
}

</mosaic_0001>

<bundles_post_ra>
// kernel: _forward.1
= control target key start
LH: loop header
LB: loop body
LE: loop exit
PB: predicated region body
PF: predicated region fallthrough
CT: control target
= control target key end

     0   :  { %12 = vsyncpa [#allocation4], 0  ;;  %s1178_s0 = inlined_call_operand.vmem [shape: f32[2,768], index: 0, kind: input, shape index: {}]   ;;  %s1179_s1 = inlined_call_operand.vmem [shape: f32[2,256], index: 1, kind: input, shape index: {}]   ;;  %s1180_s2 = inlined_call_operand.vmem [shape: f32[2,256], index: 2, kind: input, shape index: {}]   ;;  %s1181_s3 = inlined_call_operand.hbm [shape: bf16[768,128], index: 3, kind: input, shape index: {}]   ;;  %s1182_s4 = inlined_call_operand.vmem [shape: f32[1,128], index: 4, kind: input, shape index: {}]   ;;  %s1183_s5 = inlined_call_operand.<no memory space> [shape: f32[1], index: 5, kind: input, shape index: {}]   ;;  %s1184_s6 = inlined_call_operand.hbm [shape: f32[1,1], index: 6, kind: output, shape index: {}]  }
   0x1   :  { %13 = vsyncpa [#allocation5], 0  ;;  %s1054_s21 = smov [#allocation3]   ;;  %s1006_s25 = scalar_lea.hbm %s1181_s3, 6144 }
   0x2   :  { %s25_s22 = sshll.u32 %s1054_s21, 4  ;;  %p1007_p0 = scmp.ne.s32.totalorder %s1181_s3, %s1006_s25  ;;  %s26_s22 = int_to_ptr.vmem [resolvable:$true] %s25_s22 }
   0x3   :  { %p1010_p1 = scmp.lt.u32.totalorder %s1006_s25, %s1181_s3 }
   0x5   :  { %p1012_p2 = pnand %p1010_p1, %p1007_p0 }
   0x7   :  { %1015 = shalt.err (!%p1012_p2)
}
   0x8   :  { %s1016_s30 = scalar_lea.vmem %s26_s22, 6144  ;;  %p1021_p4 = scmp.lt.s32.totalorder %s26_s22, %s26_s22 }
   0x9   :  { %p1017_p3 = scmp.ne.s32.totalorder %s26_s22, %s1016_s30  ;;  %p1022_p5 = scmp.lt.s32.totalorder %s1016_s30, %s1016_s30 }
   0xb   :  { %p1023_p6 = por %p1022_p5, %p1021_p4 }
   0xd   :  { %p1024_p7 = pnand %p1023_p6, %p1017_p3 }
   0xf   :  { %1027 = shalt.err (!%p1024_p7)
}
  0x10   :  { %s1055_s7 = smov 64   ;;  %s1056_s8 = smov 4  }
  0x11   :  { %31 = dma.hbm_to_vmem [thread:$0]  %s1181_s3, 6144, %s26_s22, [#allocation4], %s1055_s7, %s1055_s7, %s1056_s8  }
  0x12   :  { %1050 = dma.done.wait [#allocation4], 6144  }
  0x13   :  { %1051 = vsyncadd [#allocation4], 4294961152  ;;  %v943_v0 = vld [vmem:[#allocation3 + $0x40] sm:$0xff]   ;;  %v947_v4 = vld [vmem:[#allocation3 + $0x48] sm:$0xff]   ;;  %v1057_v22 = vmov 1983009808   ;;  %v47_v24 = vlaneseq }
  0x14   :  { %v944_v1 = vld [vmem:[#allocation3 + $0xc0] sm:$0xff]   ;;  %871 = vmatprep.subr.bf16.mxu0 %v943_v0  ;;  %v948_v5 = vld [vmem:[#allocation3 + $0xc8] sm:$0xff]   ;;  %v951_v8 = vld [vmem:[#allocation3 + $0x50] sm:$0xff]   ;;  %v45_v23 = vunpack.c.l.s4 %v1057_v22  ;;  %vm132_vm0 = vcmask 1041408   ;;  %vm651_vm1 = vcmask 1043456   ;;  %s799_s18 = smul.f32 0.5, %s1183_s5 }
  0x15   :  { %v945_v2 = vld [vmem:[#allocation3] sm:$0xff]   ;;  %893 = vmatprep.subr.bf16.mxu1 %v944_v1  ;;  %v949_v6 = vld [vmem:[#allocation3 + $0x8] sm:$0xff]   ;;  %v952_v9 = vld [vmem:[#allocation3 + $0xd0] sm:$0xff]   ;;  %v1107_v30 = vshrl.u32 %v47_v24, 7  ;;  %s1059_s19 = smov [#allocation6]   ;;  %vm803_vm6 = vcmask 0  }
  0x16   :  { %v946_v3 = vld [vmem:[#allocation3 + $0x80] sm:$0xff]   ;;  %872 = vmatpush3.bf16.msra.mxu0 %v945_v2  ;;  %v950_v7 = vld [vmem:[#allocation3 + $0x88] sm:$0xff]   ;;  %v953_v10 = vld [vmem:[#allocation3 + $0x10] sm:$0xff]   ;;  %v46_v29 = vunpack.c.0.s8 %v45_v23  ;;  %s811_s20 = sshll.u32 %s1059_s19, 4  ;;  %s812_s20 = int_to_ptr.vmem [resolvable:$true] %s811_s20 }
  0x17   :  { %894 = vmatpush3.bf16.msra.mxu1 %v946_v3  ;;  %873 = vmatprep.subr.bf16.mxu0 %v947_v4  ;;  %v954_v11 = vld [vmem:[#allocation3 + $0x90] sm:$0xff]   ;;  %v955_v12 = vld [vmem:[#allocation3 + $0x58] sm:$0xff]   ;;  %v959_v16 = vld [vmem:[#allocation3 + $0x60] sm:$0xff]   ;;  %s1028_s21 = scalar_lea.vmem %s812_s20, 16  ;;  %s1032_s22 = scalar_lea.vmem %s812_s20, 32 }
  0x18   :  { %895 = vmatprep.subr.bf16.mxu1 %v948_v5  ;;  %v956_v13 = vld [vmem:[#allocation3 + $0xd8] sm:$0xff]   ;;  %v960_v17 = vld [vmem:[#allocation3 + $0xe0] sm:$0xff]   ;;  %v963_v20 = vld [vmem:[#allocation3 + $0x68] sm:$0xff]   ;;  %v1110_v35 = vsub.s32 %v46_v29, %v1107_v30  ;;  %p1029_p8 = scmp.ne.s32.totalorder %s812_s20, %s1028_s21  ;;  %p1033_p9 = scmp.lt.s32.totalorder %s812_s20, %s812_s20 }
  0x19   :  { %v957_v14 = vld [vmem:[#allocation3 + $0x18] sm:$0xff]   ;;  %v961_v18 = vld [vmem:[#allocation3 + $0x20] sm:$0xff]   ;;  %v964_v21 = vld [vmem:[#allocation3 + $0xe8] sm:$0xff]   ;;  %p1034_p10 = scmp.lt.s32.totalorder %s1032_s22, %s1028_s21 }
  0x1a   :  { %874 = vmatpush3.bf16.msra.mxu0 %v949_v6  ;;  %v958_v15 = vld [vmem:[#allocation3 + $0x98] sm:$0xff]   ;;  %v962_v19 = vld [vmem:[#allocation3 + $0xa0] sm:$0xff]   ;;  %v965_v25 = vld [vmem:[#allocation3 + $0x28] sm:$0xff]  }
  0x1b   :  { %896 = vmatpush3.bf16.msra.mxu1 %v950_v7  ;;  %875 = vmatprep.subr.bf16.mxu0 %v951_v8  ;;  %v966_v26 = vld [vmem:[#allocation3 + $0xa8] sm:$0xff]   ;;  %v967_v27 = vld [vmem:[#allocation3 + $0x70] sm:$0xff]   ;;  %v971_v33 = vld [vmem:[#allocation3 + $0x78] sm:$0xff]   ;;  %p1035_p11 = por %p1034_p10, %p1033_p9 }
  0x1c   :  { %897 = vmatprep.subr.bf16.mxu1 %v952_v9  ;;  %v968_v28 = vld [vmem:[#allocation3 + $0xf0] sm:$0xff]   ;;  %v972_v34 = vld [vmem:[#allocation3 + $0xf8] sm:$0xff]   ;;  %v1115_v38 = vld [vmem:[%s1179_s1] sm:$0xf] }
  0x1d   :  { %v969_v31 = vld [vmem:[#allocation3 + $0x30] sm:$0xff]   ;;  %v973_v36 = vld [vmem:[#allocation3 + $0x38] sm:$0xff]   ;;  %v50_v39 = vrot.slane %v1115_v38, %v1110_v35  ;;  %v976_v40 = vld [vmem:[#allocation3 + $0x140] sm:$0xff]   ;;  %p1036_p12 = pnand %p1035_p11, %p1029_p8 }
  0x1e   :  { %876 = vmatpush3.bf16.msra.mxu0 %v953_v10  ;;  %v970_v32 = vld [vmem:[#allocation3 + $0xb0] sm:$0xff]   ;;  %v974_v37 = vld [vmem:[#allocation3 + $0xb8] sm:$0xff]   ;;  %v40_v42 = vld [vmem:[%s1178_s0] sm:$0xff] }
  0x1f   :  { %898 = vmatpush3.bf16.msra.mxu1 %v954_v11  ;;  %877 = vmatprep.subr.bf16.mxu0 %v955_v12  ;;  %v51_v41 = vcombine.high %v50_v39, %v50_v39  ;;  %v67_v44 = vcombine.high %v40_v42, %v40_v42  ;;  %v74_v49 = vrot.slane %v40_v42, %v1110_v35  ;;  %v41_v58 = vld [vmem:[%s1178_s0 + $0x8] sm:$0xf]  ;;  %v1136_v63 = vld [vmem:[%s1180_s2] sm:$0xf]  ;;  %v983_v22 = vld [vmem:[#allocation3 + $0x118] sm:$0xff]  }
  0x20   :  { %899 = vmatprep.subr.bf16.mxu1 %v956_v13  ;;  %v90_v1 = vrot.slane %v41_v58, %v1110_v35  ;;  %v721_v2 = vrot.slane %v1136_v63, %v1110_v35  ;;  %v977_v7 = vld [vmem:[#allocation3 + $0x100] sm:$0xff]   ;;  %v978_v10 = vld [vmem:[#allocation3 + $0x148] sm:$0xff]   ;;  %v990_v29 = vld [vmem:[#allocation3 + $0x178] sm:$0xff]  }
  0x21   :  { %v52_v43 = vcombine.low %v50_v39, %v51_v41  ;;  %v81_v47 = vrot.slane %v67_v44, %v1110_v35  ;;  %v82_v53 = vcombine.high %v74_v49, %v74_v49  ;;  %v984_v23 = vld [vmem:[#allocation3 + $0x160] sm:$0xff]  }
  0x22   :  { %878 = vmatpush3.bf16.msra.mxu0 %v957_v14  ;;  %v722_v8 = vcombine.high %v721_v2, %v721_v2  ;;  %v725_v9 = vsel %vm132_vm0, %v721_v2, -inf  ;;  %v91_v11 = vcombine.high %v90_v1, %v90_v1  ;;  %v985_v24 = vld [vmem:[#allocation3 + $0x120] sm:$0xff]  }
  0x23   :  { %900 = vmatpush3.bf16.msra.mxu1 %v958_v15  ;;  %879 = vmatprep.subr.bf16.mxu0 %v959_v16  ;;  %v59_v45 = vrot.slane %v52_v43, %v1110_v35  ;;  %v83_v51 = vcombine.high %v81_v47, %v81_v47  ;;  %v979_v16 = vld [vmem:[#allocation3 + $0x108] sm:$0xff]  }
  0x24   :  { %901 = vmatprep.subr.bf16.mxu1 %v960_v17  ;;  %v726_v13 = vsel %vm132_vm0, %v722_v8, -inf  ;;  %v980_v17 = vld [vmem:[#allocation3 + $0x150] sm:$0xff]  }
  0x25   :  { %v60_v46 = vcombine.low %v59_v45, %v59_v45  ;;  %v64_v62 = vmul.f32 %v59_v45, %v41_v58  ;;  %v727_v15 = vmax.f32 %v725_v9, %v726_v13 }
  0x26   :  { %880 = vmatpush3.bf16.msra.mxu0 %v961_v18 }
  0x27   :  { %902 = vmatpush3.bf16.msra.mxu1 %v962_v19  ;;  %881 = vmatprep.subr.bf16.mxu0 %v963_v20  ;;  %v63_v48 = vmul.f32 %v60_v46, %v40_v42  ;;  %v117_v5 = vcombine.low %v64_v62, %v64_v62  ;;  %v981_v20 = vld [vmem:[#allocation3 + $0x110] sm:$0xff]  }
  0x28   :  { %903 = vmatprep.subr.bf16.mxu1 %v964_v21  ;;  %728 = vmax.xlane.f32.xlu0 %v727_v15  ;;  %v982_v21 = vld [vmem:[#allocation3 + $0x158] sm:$0xff]  }
  0x29   :  { %v100_v50 = vcombine.low %v63_v48, %v63_v48  ;;  %v114_v52 = vrot.slane %v63_v48, %v1110_v35  ;;  %v124_v12 = vrot.slane %v117_v5, %v1110_v35 }
  0x2a   :  { %882 = vmatpush3.bf16.msra.mxu0 %v965_v25  ;;  %v986_v25 = vld [vmem:[#allocation3 + $0x168] sm:$0xff]  }
  0x2b   :  { %904 = vmatpush3.bf16.msra.mxu1 %v966_v26  ;;  %883 = vmatprep.subr.bf16.mxu0 %v967_v27  ;;  %v107_v54 = vrot.slane %v100_v50, %v1110_v35  ;;  %v116_v55 = vcombine.high %v114_v52, %v114_v52  ;;  %v135_v56 = vsel %vm132_vm0, %v81_v47, %v114_v52  ;;  %v987_v26 = vld [vmem:[#allocation3 + $0x128] sm:$0xff]   ;;  %v988_v27 = vld [vmem:[#allocation3 + $0x170] sm:$0xff]  }
  0x2c   :  { %905 = vmatprep.subr.bf16.mxu1 %v968_v28  ;;  %v141_v57 = vpack.c.bf16 %v135_v56, %v135_v56  ;;  %v125_v14 = vcombine.high %v124_v12, %v124_v12  ;;  %v989_v28 = vld [vmem:[#allocation3 + $0x130] sm:$0xff]  }
  0x2d   :  { %v115_v59 = vcombine.high %v107_v54, %v107_v54  ;;  %v136_v60 = vsel %vm132_vm0, %v83_v51, %v116_v55  ;;  %v133_v61 = vsel %vm132_vm0, %v74_v49, %v107_v54 }
  0x2e   :  { %884 = vmatpush3.bf16.msra.mxu0 %v969_v31  ;;  %v142_v0 = vpack.c.bf16 %v136_v60, %v136_v60  ;;  %v139_v4 = vpack.c.bf16 %v133_v61, %v133_v61  ;;  %v138_v18 = vsel %vm132_vm0, %v91_v11, %v125_v14  ;;  %v991_v31 = vld [vmem:[#allocation3 + $0x138] sm:$0xff]  }
  0x2f   :  { %906 = vmatpush3.bf16.msra.mxu1 %v970_v32  ;;  %885 = vmatprep.subr.bf16.mxu0 %v971_v33  ;;  %v134_v3 = vsel %vm132_vm0, %v82_v53, %v115_v59  ;;  %v144_v19 = vpack.c.bf16 %v138_v18, %v138_v18  ;;  %v137_v32 = vsel %vm132_vm0, %v90_v1, %v124_v12 }
  0x30   :  { %907 = vmatprep.subr.bf16.mxu1 %v972_v34  ;;  %v140_v6 = vpack.c.bf16 %v134_v3, %v134_v3  ;;  %601 = vmatprep.mubr.bf16.mxu1 %v142_v0  ;;  %v143_v33 = vpack.c.bf16 %v137_v32, %v137_v32  ;;  %v1058_v34 = vmov 269488144  }
  0x32   :  { %886 = vmatpush3.bf16.msra.mxu0 %v973_v36  ;;  %561 = vmatprep.mubr.bf16.mxu0 %v140_v6  ;;  %v733_v36 = vunpack.c.l.s4 %v1058_v34 }
  0x33   :  { %908 = vmatpush3.bf16.msra.mxu1 %v974_v37  ;;  %915 = vmatprep.subr.bf16.mxu0 %v976_v40 }
  0x34   :  { %v734_v37 = vunpack.c.0.s8 %v733_v36 }
  0x35   :  { %562 = vmatmul.mubr.bf16.vlgmr.msra.gmra.mrb[0].mxu0 %v139_v4 }
  0x36   :  { %602 = vmatmul.mubr.bf16.vlgmr.msra.gmra.mrb[0].mxu1 %v141_v57  ;;  %916 = vmatpush3.bf16.msra.mxu0 %v977_v7  ;;  %v737_v40 = vsub.s32 %v734_v37, %v1107_v30  ;;  %v868_v7 = vld [vmem:[%s1182_s4] ss:$0 sm:$0xff] }
  0x37   :  { %917 = vmatprep.subr.bf16.mxu0 %v978_v10  ;;  %641 = vmatprep.mubr.bf16.mxu0 %v144_v19 }
  0x3a   :  { %918 = vmatpush3.bf16.msra.mxu0 %v979_v16 }
  0x3b   :  { %919 = vmatprep.subr.bf16.mxu0 %v980_v17 }
  0x3e   :  { %920 = vmatpush3.bf16.msra.mxu0 %v981_v20 }
  0x3f   :  { %921 = vmatprep.subr.bf16.mxu0 %v982_v21 }
  0x42   :  { %922 = vmatpush3.bf16.msra.mxu0 %v983_v22 }
  0x43   :  { %923 = vmatprep.subr.bf16.mxu0 %v984_v23 }
  0x46   :  { %924 = vmatpush3.bf16.msra.mxu0 %v985_v24 }
  0x47   :  { %925 = vmatprep.subr.bf16.mxu0 %v986_v25 }
  0x4a   :  { %926 = vmatpush3.bf16.msra.mxu0 %v987_v26 }
  0x4b   :  { %927 = vmatprep.subr.bf16.mxu0 %v988_v27 }
  0x4e   :  { %928 = vmatpush3.bf16.msra.mxu0 %v989_v28 }
  0x4f   :  { %929 = vmatprep.subr.bf16.mxu0 %v990_v29 }
  0x52   :  { %930 = vmatpush3.bf16.msra.mxu0 %v991_v31 }
  0x55   :  { %642 = vmatmul.mubr.bf16.vlgmr.msra.gmra.mrb[4].mxu0 %v143_v33 }
  0xb5   :  { %v729_v39 = vpop.xlane.xlu0 %728 }
  0xb6   :  { %v730_v41 = vmax.f32 %v729_v39, 1e-12 }
  0xb8   :  { %v738_v42 = vrot.slane %v730_v41, %v737_v40 }
  0xba   :  { %992 = vrcp.f32 %v738_v42 }
  0xc4   :  { %v993_v43 = vpop.eup %992 }
  0xc5   :  { %v741_v44 = vmul.f32 %v993_v43, %v1136_v63 }
  0xc7   :  { %v869_v45 = vadd.f32 -0.1, %v741_v44 }
  0xc9   :  { %v870_v46 = vmul.f32 -20.0, %v869_v45 }
  0xcb   :  { %v745_v47 = vmul.f32 1.442695, %v870_v46 }
  0xcd   :  { %994 = vpow2.f32 %v745_v47 }
  0xd7   :  { %v995_v58 = vpop.eup %994 }
  0xd8   :  { %v747_v59 = vadd.f32 1.0, %v995_v58 }
  0xda   :  { %996 = vrcp.f32 %v747_v59 }
  0xe4   :  { %v997_v60 = vpop.eup %996 }
  0xe5   :  { %v766_v61 = vmul.f32 %v997_v60, %v1115_v38  ;;  %v757_v62 = vrot.slane %v997_v60, %v1110_v35 }
  0xe7   :  { %v774_v63 = vrot.slane %v766_v61, %v1110_v35  ;;  %v758_v2 = vcombine.high %v757_v62, %v757_v62  ;;  %v761_v9 = vsel %vm132_vm0, %v757_v62, 0.0 }
  0xe9   :  { %v775_v5 = vcombine.high %v774_v63, %v774_v63  ;;  %v762_v38 = vsel %vm132_vm0, %v758_v2, 0.0  ;;  %v778_v35 = vsel %vm132_vm0, %v774_v63, 0.0 }
  0xea   :  { %v763_v15 = vadd.f32 %v762_v38, %v761_v9 }
  0xeb   :  { %v779_v12 = vsel %vm132_vm0, %v775_v5, 0.0 }
  0xec   :  { %v780_v16 = vadd.f32 %v779_v12, %v778_v35  ;;  %v800_v12 = vstv %s799_s18 }
 0x108   :  { %v887_v50 = vpop.f32.mrb[0].mxu0 }
 0x109   :  { %v909_v48 = vpop.f32.mrb[0].mxu1  ;;  %v888_v53 = vpop.f32.mrb[1].mxu0 }
 0x10a   :  { %v910_v49 = vpop.f32.mrb[1].mxu1  ;;  %v889_v55 = vadd.f32 %v888_v53, %v887_v50  ;;  %v890_v56 = vpop.f32.mrb[2].mxu0 }
 0x10b   :  { %v911_v51 = vadd.f32 %v910_v49, %v909_v48  ;;  %v912_v52 = vpop.f32.mrb[2].mxu1  ;;  %v891_v30 = vpop.f32.mrb[3].mxu0 }
 0x10c   :  { %v913_v54 = vpop.f32.mrb[3].mxu1 }
 0x10d   :  { %v604_v57 = vadd.f32 %v911_v51, %v889_v55 }
 0x128   :  { %v931_v0 = vpop.f32.mrb[4].mxu0 }
 0x129   :  { %v932_v1 = vpop.f32.mrb[5].mxu0 }
 0x12a   :  { %v933_v3 = vadd.f32 %v932_v1, %v931_v0  ;;  %v934_v4 = vpop.f32.mrb[6].mxu0 }
 0x12b   :  { %v935_v6 = vpop.f32.mrb[7].mxu0 }
 0x12c   :  { %v644_v8 = vadd.f32 %v933_v3, %v604_v57 }
 0x12e   :  { %v661_v10 = vmul.f32 %v868_v7, %v644_v8  ;;  %v650_v11 = vmul.f32 %v644_v8, %v644_v8 }
 0x130   :  { %v662_v13 = vsel %vm651_vm1, %v661_v10, 0.0  ;;  %v652_v14 = vsel %vm651_vm1, %v650_v11, 0.0 }
 0x131   :  { %663 = vadd.xlane.f32.xlu1 %v662_v13  ;;  %653 = vadd.xlane.f32.xlu0 %v652_v14 }
 0x135   :  { %764 = vadd.xlane.f32.xlu1 %v763_v15  ;;  %781 = vadd.xlane.f32.xlu0 %v780_v16 }
 0x1be   :  { %v654_v17 = vpop.xlane.xlu0 %653  ;;  %v664_v20 = vpop.xlane.xlu1 %663 }
 0x1bf   :  { %v665_v18 = vmax.f32 %v654_v17, 1e-24 }
 0x1c1   :  { %998 = vrsqrt.f32 %v665_v18 }
 0x1c2   :  { %v765_v27 = vpop.xlane.xlu1 %764  ;;  %v782_v28 = vpop.xlane.xlu0 %781 }
 0x1c3   :  { %v784_v33 = vadd.f32 %v782_v28, %v765_v27  ;;  %v783_v47 = vmul.f32 2.0, %v782_v28 }
 0x1c5   :  { %v785_v39 = vmax.f32 %v784_v33, 1e-12 }
 0x1cb   :  { %v999_v19 = vpop.eup %998 }
 0x1cc   :  { %v667_v21 = vmul.f32 %v999_v19, %v664_v20 }
 0x1ce   :  { %v668_v22 = vmul.f32 0.5, %v667_v21 }
 0x1d0   :  { %v669_v23 = vsub.f32 0.5, %v668_v22 }
 0x1d2   :  { %v670_v24 = vmax.f32 %v669_v23, 0.0 }
 0x1d4   :  { %1000 = vrsqrt.f32 %v670_v24  ;;  %vm673_vm2 = vcmp.eq.f32.partialorder %v670_v24, inf  ;;  %v676_v29 = vand.u32 2147483648, %v670_v24  ;;  %vm675_vm3 = vcmp.eq.f32.partialorder %v670_v24, 0.0 }
 0x1d5   :  { %1002 = vrcp.f32 %v785_v39 }
 0x1de   :  { %v1001_v25 = vpop.eup %1000 }
 0x1df   :  { %v672_v26 = vmul.f32 %v1001_v25, %v670_v24  ;;  %v1003_v49 = vpop.eup %1002 }
 0x1e0   :  { %v787_v52 = vmul.f32 %v1003_v49, %v783_v47 }
 0x1e1   :  { %v674_v31 = vsel %vm673_vm2, %v670_v24, %v672_v26 }
 0x1e2   :  { %v677_v32 = vsel %vm675_vm3, %v676_v29, %v674_v31  ;;  %v788_v56 = vsel %vm132_vm0, %v787_v52, 0.0 }
 0x1e3   :  { %v678_v34 = vmin.f32 %v677_v32, 1.0  ;;  %v789_v59 = vrot.slane %v788_v56, 4 }
 0x1e5   :  { %v679_v36 = vmul.f32 -0.0012624911, %v678_v34  ;;  %v693_v37 = vsub.f32 1.0, %v678_v34  ;;  %v790_v0 = vadd.f32 %v789_v59, %v788_v56 }
 0x1e7   :  { %v680_v40 = vadd.f32 0.00667009, %v679_v36  ;;  %v694_v41 = vmax.f32 %v693_v37, 0.0  ;;  %v791_v3 = vrot.slane %v790_v0, 2 }
 0x1e9   :  { %v681_v42 = vmul.f32 %v680_v40, %v678_v34  ;;  %1004 = vrsqrt.f32 %v694_v41  ;;  %vm697_vm4 = vcmp.eq.f32.partialorder %v694_v41, inf  ;;  %v700_v60 = vand.u32 2147483648, %v694_v41 }
 0x1ea   :  { %vm699_vm5 = vcmp.eq.f32.partialorder %v694_v41, 0.0  ;;  %v792_v6 = vadd.f32 %v791_v3, %v790_v0 }
 0x1eb   :  { %v682_v43 = vadd.f32 -0.017088126, %v681_v42 }
 0x1ec   :  { %v793_v9 = vrot.slane %v792_v6, 1 }
 0x1ed   :  { %v683_v44 = vmul.f32 %v682_v43, %v678_v34 }
 0x1ee   :  { %v794_v11 = vadd.f32 %v793_v9, %v792_v6 }
 0x1ef   :  { %v684_v45 = vadd.f32 0.03089188, %v683_v44 }
 0x1f0   :  { %v801_v15 = vmul.f32 %v800_v12, %v794_v11 }
 0x1f1   :  { %v685_v46 = vmul.f32 %v684_v45, %v678_v34 }
 0x1f3   :  { %v686_v48 = vadd.f32 -0.050174303, %v685_v46  ;;  %v1005_v51 = vpop.eup %1004 }
 0x1f4   :  { %v696_v55 = vmul.f32 %v1005_v51, %v694_v41 }
 0x1f5   :  { %v687_v50 = vmul.f32 %v686_v48, %v678_v34 }
 0x1f6   :  { %v698_v58 = vsel %vm697_vm4, %v694_v41, %v696_v55 }
 0x1f7   :  { %v688_v53 = vadd.f32 0.08897899, %v687_v50  ;;  %v701_v62 = vsel %vm699_vm5, %v700_v60, %v698_v58 }
 0x1f9   :  { %v689_v54 = vmul.f32 %v688_v53, %v678_v34 }
 0x1fb   :  { %v690_v30 = vadd.f32 -0.2145988, %v689_v54 }
 0x1fd   :  { %v691_v57 = vmul.f32 %v690_v30, %v678_v34 }
 0x1ff   :  { %v692_v61 = vadd.f32 1.5707963, %v691_v57 }
 0x201   :  { %v702_v63 = vmul.f32 %v701_v62, %v692_v61 }
 0x203   :  { %v703_v1 = vsub.f32 1.5707964, %v702_v63 }
 0x205   :  { %v704_v2 = vmul.f32 2.0, %v703_v1 }
 0x207   :  { %v705_v4 = vmul.f32 %v704_v2, %v703_v1 }
 0x209   :  { %v706_v5 = vsel %vm651_vm1, %v705_v4, 0.0 }
 0x20a   :  { %v707_v7 = vrot.slane %v706_v5, 4 }
 0x20c   :  { %v708_v8 = vadd.f32 %v707_v7, %v706_v5 }
 0x20e   :  { %v709_v38 = vrot.slane %v708_v8, 2 }
 0x210   :  { %v710_v10 = vadd.f32 %v709_v38, %v708_v8 }
 0x212   :  { %v711_v35 = vrot.slane %v710_v10, 1 }
 0x214   :  { %v712_v13 = vadd.f32 %v711_v35, %v710_v10 }
 0x216   :  { %v796_v14 = vmul.f32 0.25, %v712_v13 }
 0x218   :  { %v802_v16 = vsub.f32 %v796_v14, %v801_v15 }
 0x21a   :  { %804 = vst.msk [vmem:[#allocation6] sm:$0x1] %vm803_vm6, %v802_v16 }
 0x21b   :  { %1039 = shalt.err (!%p1036_p12)
}
 0x21c   :  { %s1040_s24 = scalar_lea.hbm %s1184_s6, 16 }
 0x21d   :  { %p1041_p13 = scmp.ne.s32.totalorder %s1184_s6, %s1040_s24  ;;  %p1044_p0 = scmp.lt.u32.totalorder %s1040_s24, %s1184_s6 }
 0x21f   :  { %p1046_p1 = pnand %p1044_p0, %p1041_p13 }
 0x221   :  { %1049 = shalt.err (!%p1046_p1)
}
 0x222   :  { %814 = dma.vmem_to_hbm [thread:$0]  %s812_s20, 16, %s1184_s6, [#allocation5]  }
 0x223   :  { %1052 = dma.done.wait [#allocation5], 16  }
 0x224   :  { %1053 = vsyncadd [#allocation5], 4294967280 }
 0x225   :  { %818 = vsyncpa [#allocation4], 1 }
 0x226   :  { %819 = vsyncpa [#allocation5], 1 }

</bundles_post_ra>
